<compile_context>
chip_gen: v7x
topology: tpu7x:2x2x1
jax: 0.10.0
libtpu: 0.0.40
codegen_flags: <defaults>
</compile_context>

<pallas_src>
import functools

import jax
import jax.numpy as jnp
from jax import lax
from jax.experimental import pallas as pl
from jax.experimental.pallas import tpu as pltpu

EPS = 1e-5                        # PyTorch GroupNorm default eps
_FUSED_VMEM_BUDGET = 48 << 20     # conservative: v7x has only 64 MiB physical VMEM per TC
_TARGET_TILE_BYTES = 4 << 20      # ~4 MiB (in+out) per grid step -> near HBM roofline


# ----------------------------------------------------------------------------
# Kernels
# ----------------------------------------------------------------------------
def _fused_prenorm_kernel(x_ref, g_ref, b_ref, o_ref, *, eps, inv_n, fused_fn):
    """GroupNorm(1, C) + affine + optional elementwise fn for TB whole samples."""
    x = x_ref[...].astype(jnp.float32)                        # (TB, ROWS, LANE)

    # Two-pass statistics (numerically safe); lane axis reduced first so the
    # intermediates stay (TB, ROWS, 1).
    row_sum = jnp.sum(x, axis=-1, keepdims=True)              # (TB, ROWS, 1)
    mean = jnp.sum(row_sum, axis=1, keepdims=True) * inv_n    # (TB, 1, 1)
    centered = x - mean
    row_ss = jnp.sum(centered * centered, axis=-1, keepdims=True)
    var = jnp.sum(row_ss, axis=1, keepdims=True) * inv_n
    inv = lax.rsqrt(jnp.maximum(var, 0.0) + eps)

    y = centered * inv
    y = y * g_ref[...] + b_ref[...]                            # (ROWS, 1) per-channel affine
    if fused_fn is not None:
        y = fused_fn(y)                                        # elementwise epilogue
    o_ref[...] = y.astype(o_ref.dtype)                         # lane-dense, native dtype


def _chunked_apply_kernel(mean_ref, rstd_ref, x_ref, g_ref, b_ref, o_ref, *, fused_fn):
    """Normalize + affine + fn for one row-chunk of one sample (stats precomputed)."""
    bidx = pl.program_id(0)
    mean = mean_ref[bidx]                                      # f32 scalars from SMEM
    rstd = rstd_ref[bidx]
    x = x_ref[...].astype(jnp.float32)                         # (1, TR, LANE)
    y = (x - mean) * rstd
    y = y * g_ref[...] + b_ref[...]
    if fused_fn is not None:
        y = fused_fn(y)
    o_ref[...] = y.astype(o_ref.dtype)


# ----------------------------------------------------------------------------
# Layout / tiling helpers
# ----------------------------------------------------------------------------
def _pack_layout(x_nchw, gamma, beta):
    B, C, H, W = x_nchw.shape
    HW = H * W
    g32 = gamma.astype(jnp.float32)
    b32 = beta.astype(jnp.float32)
    if HW % 128 == 0:
        # Fold spatial rows into the sublane axis: one sample -> (C*HW/128, 128).
        # Full vregs even for small C, and an exactly-lane-dense (multiple-of-128) store.
        r = HW // 128
        rows, lane = C * r, 128
        x_p = x_nchw.reshape(B, rows, lane)
        g = jnp.repeat(g32, r).reshape(rows, 1)                # row j belongs to channel j//r
        b = jnp.repeat(b32, r).reshape(rows, 1)
    else:
        # TODO(synk): pad HW up to a multiple of 128 (with masked statistics) to avoid
        # masked vst.msk partial stores for odd spatial sizes.
        rows, lane = C, HW
        x_p = x_nchw.reshape(B, rows, lane)
        g = g32.reshape(rows, 1)
        b = b32.reshape(rows, 1)
    return x_p, g, b, rows, lane


def _pick_tb(batch, per_sample_bytes):
    cap = max(1, _TARGET_TILE_BYTES // max(1, per_sample_bytes))
    if batch >= 2:
        cap = min(cap, pl.cdiv(batch, 2))   # keep >= 2 grid steps: both v7x TCs stay busy
    cap = int(min(cap, batch))
    for t in range(cap, 0, -1):             # prefer a divisor of batch -> no padded tail block
        if batch % t == 0:
            return t
    return 1


# ----------------------------------------------------------------------------
# Fused fast path: one pallas_call, whole samples resident in VMEM
# ----------------------------------------------------------------------------
def _fused_groupnorm(x_p, g, b, out_dtype, rows, lane, eps, fused_fn):
    B = x_p.shape[0]
    bytes_in = rows * lane * x_p.dtype.itemsize
    bytes_out = rows * lane * jnp.dtype(out_dtype).itemsize
    tb = _pick_tb(B, bytes_in + bytes_out)

    # 2x for double-buffered input and output tiles, plus params and slack.
    vmem_bytes = 2 * tb * (bytes_in + bytes_out) + 2 * g.size * 4 + (4 << 20)
    vmem_bytes = int(min(max(vmem_bytes, 32 << 20), 64 << 20))

    kern = functools.partial(_fused_prenorm_kernel, eps=eps,
                             inv_n=1.0 / float(rows * lane), fused_fn=fused_fn)
    return pl.pallas_call(
        kern,
        out_shape=jax.ShapeDtypeStruct((B, rows, lane), out_dtype),
        grid=(pl.cdiv(B, tb),),
        in_specs=[
            pl.BlockSpec((tb, rows, lane), lambda i: (i, 0, 0)),   # TB whole samples
            pl.BlockSpec((rows, 1), lambda i: (0, 0)),             # gamma (expanded)
            pl.BlockSpec((rows, 1), lambda i: (0, 0)),             # beta  (expanded)
        ],
        out_specs=pl.BlockSpec((tb, rows, lane), lambda i: (i, 0, 0)),
        compiler_params=pltpu.CompilerParams(
            dimension_semantics=("parallel",),                     # batch is independent
            vmem_limit_bytes=vmem_bytes,
        ),
    )(x_p, g, b)


# ----------------------------------------------------------------------------
# Large-sample fallback: XLA stats pass + row-chunked Pallas normalize pass
# ----------------------------------------------------------------------------
def _chunked_groupnorm(x_p, g, b, out_dtype, rows, lane, eps, fused_fn):
    B = x_p.shape[0]

    # Pass 1: per-sample statistics in plain JAX (one streaming HBM read), f32 math.
    xf = x_p.reshape(B, -1).astype(jnp.float32)
    mean = jnp.mean(xf, axis=1)
    var = jnp.mean(jnp.square(xf - mean[:, None]), axis=1)
    rstd = lax.rsqrt(jnp.maximum(var, 0.0) + eps)

    # Pass 2: row-chunked normalize + affine + fn (one read + one write of x).
    if rows <= 8:
        tr = rows
    else:
        target_rows = max(8, (((_TARGET_TILE_BYTES // 2) // (lane * 4)) // 8) * 8)
        tr = min(rows, target_rows)                            # multiple of 8 or full rows

    kern = functools.partial(_chunked_apply_kernel, fused_fn=fused_fn)
    return pl.pallas_call(
        kern,
        out_shape=jax.ShapeDtypeStruct((B, rows, lane), out_dtype),
        grid=(B, pl.cdiv(rows, tr)),
        in_specs=[
            pl.BlockSpec(memory_space=pltpu.MemorySpace.SMEM),     # mean (B,) f32 in SMEM
            pl.BlockSpec(memory_space=pltpu.MemorySpace.SMEM),     # rstd (B,) f32 in SMEM
            pl.BlockSpec((1, tr, lane), lambda i, j: (i, j, 0)),
            pl.BlockSpec((tr, 1), lambda i, j: (j, 0)),
            pl.BlockSpec((tr, 1), lambda i, j: (j, 0)),
        ],
        out_specs=pl.BlockSpec((1, tr, lane), lambda i, j: (i, j, 0)),
        compiler_params=pltpu.CompilerParams(
            dimension_semantics=("parallel", "parallel"),
        ),
    )(mean, rstd, x_p, g, b)


# ----------------------------------------------------------------------------
# Public API
# ----------------------------------------------------------------------------
def group_norm_prenorm(x_nchw, gamma, beta, *, eps=EPS, fused_fn=None, force_chunked=False):
    """GroupNorm(num_groups=1) over NCHW input with an optional fused elementwise epilogue."""
    B, C, H, W = x_nchw.shape
    out_dtype = x_nchw.dtype
    x_p, g, b, rows, lane = _pack_layout(x_nchw, gamma, beta)

    per_sample_bytes = rows * lane * (x_p.dtype.itemsize + jnp.dtype(out_dtype).itemsize)
    fits_in_vmem = (2 * per_sample_bytes + (4 << 20)) <= _FUSED_VMEM_BUDGET

    if fits_in_vmem and not force_chunked:
        out = _fused_groupnorm(x_p, g, b, out_dtype, rows, lane, eps, fused_fn)
    else:
        out = _chunked_groupnorm(x_p, g, b, out_dtype, rows, lane, eps, fused_fn)
    return out.reshape(B, C, H, W)


def pre_norm_hugging_face(x_nchw, params, fn=None, *, eps=EPS,
                          fuse_fn_in_kernel=True, force_chunked=False):
    """forward(x) = fn(GroupNorm(1, dim)(x)).

    `fn` is a JAX callable (None = identity).  It is fused into the kernel epilogue only
    when `fuse_fn_in_kernel=True`; the fused path sees one VMEM block at a time, so the
    callable MUST be elementwise.  For anything with spatial/channel mixing, pass
    `fuse_fn_in_kernel=False` and it runs as plain JAX after the Pallas call.
    """
    fused = fn if (fn is not None and fuse_fn_in_kernel) else None
    y = group_norm_prenorm(x_nchw, params["gn_g"], params["gn_b"], eps=eps,
                           fused_fn=fused, force_chunked=force_chunked)
    if fn is not None and fused is None:
        y = fn(y)
    return y


# ----------------------------------------------------------------------------
# Pure-JAX reference (mirrors the PyTorch module) for validation
# ----------------------------------------------------------------------------
def reference_forward(x, params, fn, eps=EPS):
    B, C, H, W = x.shape
    xf = x.astype(jnp.float32)
    m = xf.reshape(B, -1).mean(axis=1).reshape(B, 1, 1, 1)
    v = jnp.square(xf - m).reshape(B, -1).mean(axis=1).reshape(B, 1, 1, 1)
    y = (xf - m) * lax.rsqrt(v + eps)
    y = y * params["gn_g"].reshape(1, C, 1, 1) + params["gn_b"].reshape(1, C, 1, 1)
    return fn(y) if fn is not None else y


if __name__ == "__main__":
    B, dim, H, W = 2, 4, 16, 16

    key = jax.random.PRNGKey(0)
    kx, kg, kb = jax.random.split(key, 3)
    x = jax.random.normal(kx, (B, dim, H, W), jnp.float32)          # NCHW like PyTorch
    params = {
        # PyTorch inits weight=1 / bias=0; randomize to exercise the affine path.
        "gn_g": 1.0 + 0.1 * jax.random.normal(kg, (dim,), jnp.float32),
        "gn_b": 0.1 * jax.random.normal(kb, (dim,), jnp.float32),
    }
    fn = lambda y: y * jax.nn.sigmoid(y)                            # elementwise SiLU `fn`

    # --- fused fast path (f32 HBM I/O) ---------------------------------------------
    out = jax.block_until_ready(pre_norm_hugging_face(x, params, fn))
    ref = reference_forward(x, params, fn)
    assert out.shape == (B, dim, H, W), out.shape
    err = float(jnp.max(jnp.abs(out - ref)))
    assert err < 1e-4, f"fused path mismatch vs reference: {err}"

    # --- bf16 HBM I/O path (compute stays f32 in-kernel) ----------------------------
    x_bf16 = x.astype(jnp.bfloat16)
    out_bf = jax.block_until_ready(pre_norm_hugging_face(x_bf16, params, fn))
    ref_bf = reference_forward(x_bf16, params, fn)
    assert out_bf.dtype == jnp.bfloat16, out_bf.dtype
    err_bf = float(jnp.max(jnp.abs(out_bf.astype(jnp.float32) - ref_bf)))
    assert err_bf < 5e-2, f"bf16 path mismatch vs reference: {err_bf}"

    # --- chunked large-sample fallback (forced here at small shape to validate) -----
    out_ck = jax.block_until_ready(pre_norm_hugging_face(x, params, fn, force_chunked=True))
    err_ck = float(jnp.max(jnp.abs(out_ck - ref)))
    assert err_ck < 1e-4, f"chunked path mismatch vs reference: {err_ck}"

    print("KERNEL_OK")
</pallas_src>

<mosaic_0001>
module attributes {stable_mosaic.version = 11 : i64} {
  func.func @_fused_prenorm_kernel(%arg0: i32, %arg1: memref<1x8x128xf32, #tpu.memory_space<vmem>>, %arg2: memref<8x1xf32, #tpu.memory_space<vmem>>, %arg3: memref<8x1xf32, #tpu.memory_space<vmem>>, %arg4: memref<1x8x128xf32, #tpu.memory_space<vmem>>) attributes {dimension_semantics = [#tpu.dimension_semantics<parallel>], iteration_bounds = array<i64: 2>, scalar_prefetch = 0 : i64, scratch_operands = 0 : i64, tpu.core_type = #tpu.core_type<tc>, window_params = [{transform_indices = @transform_0, window_bounds = array<i64: 1, 8, 128>}, {pipeline_mode = #tpu.pipeline_mode<synchronous>, transform_indices = @transform_1, window_bounds = array<i64: 8, 1>}, {pipeline_mode = #tpu.pipeline_mode<synchronous>, transform_indices = @transform_2, window_bounds = array<i64: 8, 1>}, {transform_indices = @transform_3, window_bounds = array<i64: 1, 8, 128>}]} {
    %c0 = arith.constant 0 : index
    %c0_0 = arith.constant 0 : index
    %c0_1 = arith.constant 0 : index
    %0 = vector.load %arg1[%c0, %c0_0, %c0_1] : memref<1x8x128xf32, #tpu.memory_space<vmem>>, vector<1x8x128xf32>
    %cst = arith.constant dense<0.000000e+00> : vector<1x8xf32>
    %1 = vector.multi_reduction <add>, %0, %cst [2] : vector<1x8x128xf32> to vector<1x8xf32>
    %2 = vector.shape_cast %1 : vector<1x8xf32> to vector<1x8x1xf32>
    %cst_2 = arith.constant dense<0.000000e+00> : vector<1x1xf32>
    %3 = vector.multi_reduction <add>, %2, %cst_2 [1] : vector<1x8x1xf32> to vector<1x1xf32>
    %4 = vector.shape_cast %3 : vector<1x1xf32> to vector<1x1x1xf32>
    %cst_3 = arith.constant 9.765625E-4 : f32
    %5 = vector.broadcast %cst_3 : f32 to vector<1x1x1xf32>
    %6 = arith.mulf %4, %5 : vector<1x1x1xf32>
    %7 = vector.broadcast %6 : vector<1x1x1xf32> to vector<1x8x128xf32>
    %8 = arith.subf %0, %7 : vector<1x8x128xf32>
    %9 = arith.mulf %8, %8 : vector<1x8x128xf32>
    %cst_4 = arith.constant dense<0.000000e+00> : vector<1x8xf32>
    %10 = vector.multi_reduction <add>, %9, %cst_4 [2] : vector<1x8x128xf32> to vector<1x8xf32>
    %11 = vector.shape_cast %10 : vector<1x8xf32> to vector<1x8x1xf32>
    %cst_5 = arith.constant dense<0.000000e+00> : vector<1x1xf32>
    %12 = vector.multi_reduction <add>, %11, %cst_5 [1] : vector<1x8x1xf32> to vector<1x1xf32>
    %13 = vector.shape_cast %12 : vector<1x1xf32> to vector<1x1x1xf32>
    %cst_6 = arith.constant 9.765625E-4 : f32
    %14 = vector.broadcast %cst_6 : f32 to vector<1x1x1xf32>
    %15 = arith.mulf %13, %14 : vector<1x1x1xf32>
    %cst_7 = arith.constant 0.000000e+00 : f32
    %16 = vector.broadcast %cst_7 : f32 to vector<1x1x1xf32>
    %17 = arith.maximumf %15, %16 : vector<1x1x1xf32>
    %cst_8 = arith.constant 9.99999974E-6 : f32
    %18 = vector.broadcast %cst_8 : f32 to vector<1x1x1xf32>
    %19 = arith.addf %17, %18 : vector<1x1x1xf32>
    %20 = math.rsqrt %19 : vector<1x1x1xf32>
    %21 = vector.broadcast %20 : vector<1x1x1xf32> to vector<1x8x128xf32>
    %22 = arith.mulf %8, %21 : vector<1x8x128xf32>
    %c0_9 = arith.constant 0 : index
    %c0_10 = arith.constant 0 : index
    %23 = vector.load %arg2[%c0_9, %c0_10] : memref<8x1xf32, #tpu.memory_space<vmem>>, vector<8x1xf32>
    %24 = vector.shape_cast %23 : vector<8x1xf32> to vector<1x8x1xf32>
    %25 = vector.broadcast %24 : vector<1x8x1xf32> to vector<1x8x128xf32>
    %26 = arith.mulf %22, %25 : vector<1x8x128xf32>
    %c0_11 = arith.constant 0 : index
    %c0_12 = arith.constant 0 : index
    %27 = vector.load %arg3[%c0_11, %c0_12] : memref<8x1xf32, #tpu.memory_space<vmem>>, vector<8x1xf32>
    %28 = vector.shape_cast %27 : vector<8x1xf32> to vector<1x8x1xf32>
    %29 = vector.broadcast %28 : vector<1x8x1xf32> to vector<1x8x128xf32>
    %30 = arith.addf %26, %29 : vector<1x8x128xf32>
    %31 = arith.negf %30 : vector<1x8x128xf32>
    %32 = math.exp %31 : vector<1x8x128xf32>
    %cst_13 = arith.constant 1.000000e+00 : f32
    %33 = vector.broadcast %cst_13 : f32 to vector<1x8x128xf32>
    %34 = arith.addf %33, %32 : vector<1x8x128xf32>
    %35 = arith.divf %33, %34 : vector<1x8x128xf32>
    %36 = arith.mulf %30, %35 : vector<1x8x128xf32>
    %c0_14 = arith.constant 0 : index
    %c0_15 = arith.constant 0 : index
    %c0_16 = arith.constant 0 : index
    %37 = vector.load %arg4[%c0_14, %c0_15, %c0_16] : memref<1x8x128xf32, #tpu.memory_space<vmem>>, vector<1x8x128xf32>
    tpu.vector_store %arg4[%c0_14, %c0_15, %c0_16], %36 {strides = array<i32>} : memref<1x8x128xf32, #tpu.memory_space<vmem>>, vector<1x8x128xf32>,
    return
  }
  func.func @transform_0(%arg0: i32) -> (i32, i32, i32) {
    %c0_i32 = arith.constant 0 : i32
    %c0_i32_0 = arith.constant 0 : i32
    %c0_i32_1 = arith.constant 0 : i32
    return %arg0, %c0_i32, %c0_i32_0 : i32, i32, i32
  }
  func.func @transform_1(%arg0: i32) -> (i32, i32) {
    %c0_i32 = arith.constant 0 : i32
    %c0_i32_0 = arith.constant 0 : i32
    %c0_i32_1 = arith.constant 0 : i32
    return %c0_i32, %c0_i32_0 : i32, i32
  }
  func.func @transform_2(%arg0: i32) -> (i32, i32) {
    %c0_i32 = arith.constant 0 : i32
    %c0_i32_0 = arith.constant 0 : i32
    %c0_i32_1 = arith.constant 0 : i32
    return %c0_i32, %c0_i32_0 : i32, i32
  }
  func.func @transform_3(%arg0: i32) -> (i32, i32, i32) {
    %c0_i32 = arith.constant 0 : i32
    %c0_i32_0 = arith.constant 0 : i32
    %c0_i32_1 = arith.constant 0 : i32
    return %arg0, %c0_i32, %c0_i32_0 : i32, i32, i32
  }
}

</mosaic_0001>

<bundles_post_ra>
// kernel: tpu_custom_call.1
= control target key start
LH: loop header
LB: loop body
LE: loop exit
PB: predicated region body
PF: predicated region fallthrough
CT: control target
= control target key end

     0   :  { %8 = vsyncpa [#allocation3], 0  ;;  %s537_s0 = inlined_call_operand.vmem [shape: f32[2,8,128], index: 0, kind: input, shape index: {}]   ;;  %s538_s1 = inlined_call_operand.vmem [shape: f32[8,1], index: 1, kind: input, shape index: {}]   ;;  %s539_s2 = inlined_call_operand.vmem [shape: f32[8,1], index: 2, kind: input, shape index: {}]   ;;  %s540_s3 = inlined_call_operand.hbm [shape: f32[2,8,128], index: 3, kind: output, shape index: {}]  }
   0x1   :  { %10 = vsyncpa [#allocation3 + $0x1], 0  ;;  %s431_s12 = smov 0   ;;  %s433_s13 = smov 0  }
   0x2   :  { %s435_s14 = smov 0   ;;  %s437_s15 = smov 0  }
   0x3 LB: > { %s452_s16 = sadd.s32 4294967295, %s407_s15   ;;  %s286_s17 = sadd.s32 4294967294, %s407_s15   ;;  %s407_s15 = sphi %s437_s15, %s546_s15   ;;  %s403_s14 = sphi %s435_s14, %s545_s14   ;;  %s399_s13 = sphi %s433_s13, %s544_s13   ;;  %s395_s12 = sphi %s431_s12, %s543_s12  }
   0x4   : > { %s456_s18 = sadd.s32 1, %s407_s15   ;;  %s91_s19 = sadd.s32 1, %s403_s14 }
   0x5   : > { %s88_s20 = ssub.s32 %s407_s15, %s456_s18  ;;  %p101_p0 = scmp.ne.s32.totalorder %s403_s14, %s399_s13 }
   0x6   : > { %p89_p1 = scmp.eq.s32.totalorder %s88_s20, 0  ;;  %p102_p2 = scmp.eq.s32.totalorder %s452_s16, 1 }
   0x7   : > { %p107_p3 = scmp.ne.s32.totalorder %s399_s13, %s395_s12  ;;  %p108_p4 = scmp.eq.s32.totalorder %s286_s17, 1 }
   0x8   : > { %s467_s21 = scalar_select %p89_p1, %s403_s14, %s91_s19  }
   0x9   : > { %p469_p5 = por %p102_p2, %p101_p0  ;;  %p473_p6 = por %p108_p4, %p107_p3 }
   0xa   : > { %p289_p7 = scmp.ge.s32.totalorder %s407_s15, 1  ;;  %p139_p8 = scmp.lt.s32.totalorder %s407_s15, 3 }
   0xc   : > { %p140_p9 = pnand %p289_p7, %p139_p8 }
   0xd   : > { %p162_p10 = scmp.lt.s32.totalorder (!%p140_p9), %s452_s16, 1  ;;  %v191_v1 = vld [vmem:[%s538_s1] sm:$0xff] (!%p140_p9)  ;;  %v409_v2 = vmov (!%p140_p9), 0   ;;  %s159_s6 = sand.u32 (!%p140_p9), 1, %s399_s13  }
   0xe   : > { %143 = sbr.rel (%p140_p9) target bundleno = 405 (0x195), region = 32  ;;  %337 = vset.pattern.permute.xlu1 (!%p140_p9), %v409_v2  ;;  %338 = vset.pattern.permute.xlu0 (!%p140_p9), %v409_v2  ;;  %v198_v3 = vld [vmem:[%s539_s2] sm:$0xff] (!%p140_p9)  ;;  %s290_s7 = sshll.u32 (!%p140_p9), %s159_s6, 3 }
   0xf   : > { %194 = vperm.xlu1 (!%p140_p9), %337, %v191_v1   ;;  %s294_s8 = sshll.u32 (!%p140_p9), %s452_s16, 7  ;;  %s161_s9 = scalar_lea.vmem (!%p140_p9), [#allocation2], %s290_s7 }
  0x10   : > { %s227_s10 = sshll.u32 (!%p140_p9), %s161_s9, 4  ;;  %s495_s19 = scalar_lea.hbm (!%p140_p9), %s540_s3, %s294_s8  ;;  %s497_s10 = int_to_ptr.vmem [resolvable:$true] %s227_s10 }
  0x11   : > { %s214_s20 = scalar_lea.sflag (!%p140_p9), [#allocation3], %s159_s6 }
  0x13   : > { %201 = vperm.xlu1 (!%p140_p9), %337, %v198_v3  }
  0x15   : > { %s163_s24 = scalar_select %p162_p10, %s452_s16, 1 }
  0x16   : > { %s410_s16 = smov [#allocation2]  }
  0x17   : > { %s291_s25 = sshll.u32 %s163_s24, 3  ;;  %s345_s24 = scalar_lea.vmem %s497_s10, 128 }
  0x18   : > { %s165_s28 = scalar_lea.vmem %s537_s0, %s291_s25  ;;  %p346_p11 = scmp.ne.s32.totalorder %s497_s10, %s345_s24 }
  0x19   : > { %v166_v0 = vld [vmem:[%s165_s28] sm:$0xff]  ;;  %s349_s25 = sshll.u32 %s410_s16, 4  ;;  %s350_s25 = int_to_ptr.vmem [resolvable:$false] %s349_s25 }
  0x1a   : > { %167 = vadd.xlane.f32.xlu0 %v166_v0  ;;  %p347_p12 = pnand %p346_p11, %p469_p5  ;;  %s351_s26 = scalar_lea.vmem %s350_s25, 256 }
  0x1b   : > { %p352_p0 = scmp.lt.s32.totalorder %s497_s10, %s350_s25  ;;  %p353_p1 = scmp.lt.s32.totalorder %s351_s26, %s345_s24 }
  0x1c   : > { %p348_p13 = pneg %p347_p12 }
  0x1d   : > { %p354_p2 = por %p353_p1, %p352_p0 }
  0x1f   : > { %p355_p3 = pnand %p354_p2, %p348_p13 }
  0x8e   : > { %v195_v24 = vpop.permute.xlu1 %194 }
  0x92   : > { %v202_v28 = vpop.permute.xlu1 %201 }
  0xa7   : > { %v168_v4 = vpop.xlane.xlu0 %167 }
  0xa8   : > { %v169_v5 = vrot.slane %v168_v4, 4 }
  0xaa   : > { %v170_v6 = vadd.f32 %v169_v5, %v168_v4 }
  0xac   : > { %v171_v7 = vrot.slane %v170_v6, 2 }
  0xae   : > { %v172_v8 = vadd.f32 %v171_v7, %v170_v6 }
  0xb0   : > { %v173_v9 = vrot.slane %v172_v8, 1 }
  0xb2   : > { %v174_v10 = vadd.f32 %v173_v9, %v172_v8 }
  0xb4   : > { %v175_v11 = vmul.f32 0.0009765625, %v174_v10 }
  0xb6   : > { %v176_v12 = vsub.f32 %v166_v0, %v175_v11 }
  0xb8   : > { %v177_v13 = vmul.f32 %v176_v12, %v176_v12 }
  0xba   : > { %178 = vadd.xlane.f32.xlu0 %v177_v13 }
 0x147   : > { %v179_v14 = vpop.xlane.xlu0 %178 }
 0x148   : > { %v180_v15 = vrot.slane %v179_v14, 4 }
 0x14a   : > { %v181_v16 = vadd.f32 %v180_v15, %v179_v14 }
 0x14c   : > { %v182_v17 = vrot.slane %v181_v16, 2 }
 0x14e   : > { %v183_v18 = vadd.f32 %v182_v17, %v181_v16 }
 0x150   : > { %v184_v19 = vrot.slane %v183_v18, 1 }
 0x152   : > { %v185_v20 = vadd.f32 %v184_v19, %v183_v18 }
 0x154   : > { %v186_v21 = vmul.f32 0.0009765625, %v185_v20 }
 0x156   : > { %v187_v22 = vmax.f32 %v186_v21, 0.0 }
 0x158   : > { %v188_v23 = vadd.f32 1e-05, %v187_v22 }
 0x15a   : > { %339 = vrsqrt.f32 %v188_v23 }
 0x164   : > { %v340_v25 = vpop.eup %339 }
 0x165   : > { %v190_v26 = vmul.f32 %v340_v25, %v176_v12 }
 0x167   : > { %v197_v27 = vmul.f32 %v195_v24, %v190_v26 }
 0x169   : > { %v204_v29 = vadd.f32 %v202_v28, %v197_v27 }
 0x16b   : > { %v292_v30 = vmul.f32 -1.442695, %v204_v29 }
 0x16d   : > { %341 = vpow2.f32 %v292_v30 }
 0x177   : > { %v342_v31 = vpop.eup %341 }
 0x178   : > { %v208_v32 = vadd.f32 1.0, %v342_v31 }
 0x17a   : > { %343 = vrcp.f32 %v208_v32 }
 0x184   : > { %v344_v33 = vpop.eup %343 }
 0x185   : > { %v211_v34 = vmul.f32 %v344_v33, %v204_v29 }
 0x187   : > { %212 = vst [vmem:[%s161_s9] sm:$0xff] %v211_v34 }
 0x188   : > { %358 = shalt.err (!%p355_p3)
}
 0x189   : > { %s359_s27 = scalar_lea.hbm %s495_s19, 128  ;;  %s363_s30 = scalar_lea.hbm %s540_s3, 256 }
 0x18a   : > { %p360_p4 = scmp.ne.s32.totalorder %s495_s19, %s359_s27  ;;  %p364_p9 = scmp.lt.u32.totalorder %s495_s19, %s540_s3 }
 0x18b   : > { %p365_p10 = scmp.lt.u32.totalorder %s363_s30, %s359_s27  ;;  %p367_p12 = scmp.lt.u32.totalorder %s359_s27, %s495_s19 }
 0x18c   : > { %p361_p7 = pnand %p360_p4, %p469_p5 }
 0x18d   : > { %p366_p11 = por %p365_p10, %p364_p9 }
 0x18e   : > { %p362_p8 = pneg %p361_p7 }
 0x18f   : > { %p368_p13 = por %p367_p12, %p366_p11 }
 0x191   : > { %p369_p0 = pnand %p368_p13, %p362_p8 }
 0x193   : > { %372 = shalt.err (!%p369_p0)
}
 0x194   : > { %297 = dma.vmem_to_hbm [thread:$0]  (%p469_p5), %s497_s10, 128, %s495_s19, %s214_s20  }
 0x195 PF: > { %p303_p1 = scmp.ge.s32.totalorder %s407_s15, 2  ;;  %s239_s6 = sand.u32 1, %s395_s12  }
 0x196   : > { %s240_s7 = scalar_lea.sflag [#allocation3], %s239_s6 }
 0x197   : > { %p300_p2 = pnand %p303_p1, %p473_p6 }
 0x199   : > { %390 = dma.done.wait (!%p300_p2), %s240_s7, 128  }
 0x19a   : > { %392 = vsyncadd (!%p300_p2), %s240_s7, 4294967168  ;;  %p13_p3 = scmp.ge.s32.totalorder %s456_s18, 4   ;;  %s543_s12 = smov %s399_s13 }
 0x19b   : > { %s544_s13 = smov %s403_s14  ;;  %s545_s14 = smov %s467_s21 }
 0x19c   : > { %s546_s15 = smov %s456_s18  ;;  %15 = sbr.rel (!%p13_p3) target bundleno = 3 (0x3), region = 67 }
 0x1a3   :  { %245 = vsyncpa [#allocation3], 1 }
 0x1a4   :  { %247 = vsyncpa [#allocation3 + $0x1], 1 }

</bundles_post_ra>
